<compile_context>
chip_gen: v5e
topology: v5e:2x2
jax: 0.10.0
libtpu: 0.0.40
codegen_flags: <defaults>
</compile_context>

<pallas_src>
import functools

import jax
import jax.numpy as jnp
from jax.experimental import pallas as pl
from jax.experimental.pallas import tpu as pltpu

BN_EPS = 1e-5
_VMEM_LIMIT = 32 * 1024 * 1024        # <= default scoped VMEM on v6e/v7x, raised vs v5e's 16 MiB
_FUSED_BYTES_CAP = 8 * 1024 * 1024    # conservative: leaves room for double-buffering + temps


def _matmul_cm(w, x):
    """(Co, Ci) @ (Ci, T) -> (Co, T) in f32.

    For tiny channel counts a matmul uses <1% of the MXU, so unroll it as Ci
    broadcast multiply-adds on the VPU; larger Ci*Co use the MXU.
    """
    co, ci = w.shape
    w = w.astype(jnp.float32)
    x = x.astype(jnp.float32)
    if ci * co <= 256:
        acc = w[:, 0:1] * x[0:1, :]
        for k in range(1, ci):
            acc = acc + w[:, k:k + 1] * x[k:k + 1, :]
        return acc
    return jnp.dot(w, x, preferred_element_type=jnp.float32)


# ----------------------------- fused (resident-x) path -----------------------------

def _make_fused_kernel(n, hw, hw_pad, m_total):
    padded = hw_pad != hw
    inv_m = 1.0 / float(m_total)

    def kernel(x_ref, w1_ref, w2_ref, gb_ref, o_ref):
        cout = w1_ref.shape[0]
        w1 = w1_ref[...]
        w2 = w2_ref[...]
        if padded:
            pix = jax.lax.broadcasted_iota(jnp.int32, (1, hw_pad), 1)
            valid = pix < hw

        def fold(s, q, g, b):
            mean = s * inv_m
            var = jnp.maximum(q * inv_m - mean * mean, 0.0)   # biased var (training BN)
            sc = g * jax.lax.rsqrt(var + BN_EPS)
            return sc, b - mean * sc

        # phase 1: per-channel stats of h1 = W1 @ x  (zero-padded pixels contribute 0)
        s1 = jnp.zeros((cout, 1), jnp.float32)
        q1 = jnp.zeros((cout, 1), jnp.float32)
        for i in range(n):
            h1 = _matmul_cm(w1, x_ref[i])
            s1 = s1 + jnp.sum(h1, axis=1, keepdims=True)
            q1 = q1 + jnp.sum(h1 * h1, axis=1, keepdims=True)
        sc1, sh1 = fold(s1, q1, gb_ref[:, 0:1], gb_ref[:, 1:2])

        # phase 2: stats of h2 = W2 @ relu(BN1(h1))
        s2 = jnp.zeros((cout, 1), jnp.float32)
        q2 = jnp.zeros((cout, 1), jnp.float32)
        for i in range(n):
            h1 = _matmul_cm(w1, x_ref[i])
            a1 = jnp.maximum(h1 * sc1 + sh1, 0.0)
            h2 = _matmul_cm(w2, a1)
            if padded:
                h2 = jnp.where(valid, h2, 0.0)   # BN1 shift makes padded pixels nonzero
            s2 = s2 + jnp.sum(h2, axis=1, keepdims=True)
            q2 = q2 + jnp.sum(h2 * h2, axis=1, keepdims=True)
        sc2, sh2 = fold(s2, q2, gb_ref[:, 2:3], gb_ref[:, 3:4])

        # phase 3: apply both blocks; padded lanes are sliced off by the wrapper
        for i in range(n):
            h1 = _matmul_cm(w1, x_ref[i])
            a1 = jnp.maximum(h1 * sc1 + sh1, 0.0)
            h2 = _matmul_cm(w2, a1)
            o_ref[i] = jnp.maximum(h2 * sc2 + sh2, 0.0).astype(o_ref.dtype)

    return kernel


# ------------------------------- tiled 3-pass path ---------------------------------

def _stats1_kernel(x_ref, w1_ref, stat_ref):
    """Accumulate per-channel [sum, sumsq] of h1 = W1 @ x over pixel tiles."""
    @pl.when(pl.program_id(2) == 0)
    def _():
        stat_ref[...] = jnp.zeros_like(stat_ref)
    h = _matmul_cm(w1_ref[...], x_ref[...])
    s = jnp.sum(h, axis=1, keepdims=True)
    q = jnp.sum(h * h, axis=1, keepdims=True)
    stat_ref[...] += jnp.concatenate([s, q], axis=1)


def _make_stats2_kernel(hw, tile, tiles_per_split, padded):
    """Accumulate per-channel [sum, sumsq] of h2 = W2 @ relu(BN1(W1 @ x))."""
    def kernel(x_ref, w1_ref, w2_ref, bn1_ref, stat_ref):
        @pl.when(pl.program_id(2) == 0)
        def _():
            stat_ref[...] = jnp.zeros_like(stat_ref)
        h1 = _matmul_cm(w1_ref[...], x_ref[...])
        a1 = jnp.maximum(h1 * bn1_ref[:, 0:1] + bn1_ref[:, 1:2], 0.0)
        h2 = _matmul_cm(w2_ref[...], a1)
        if padded:
            base = (pl.program_id(0) * tiles_per_split + pl.program_id(2)) * tile
            pix = base + jax.lax.broadcasted_iota(jnp.int32, (1, tile), 1)
            h2 = jnp.where(pix < hw, h2, 0.0)
        s = jnp.sum(h2, axis=1, keepdims=True)
        q = jnp.sum(h2 * h2, axis=1, keepdims=True)
        stat_ref[...] += jnp.concatenate([s, q], axis=1)
    return kernel


def _apply_kernel(x_ref, w1_ref, w2_ref, bn_ref, o_ref):
    """out = relu(BN2(W2 @ relu(BN1(W1 @ x)))) for one (C, TILE) slab."""
    h1 = _matmul_cm(w1_ref[...], x_ref[...])
    a1 = jnp.maximum(h1 * bn_ref[:, 0:1] + bn_ref[:, 1:2], 0.0)
    h2 = _matmul_cm(w2_ref[...], a1)
    o_ref[...] = jnp.maximum(h2 * bn_ref[:, 2:3] + bn_ref[:, 3:4], 0.0).astype(o_ref.dtype)


def _plan_tiles(hw, max_tile):
    """Return (hw_pad, tile): tile is a multiple of 128 dividing hw_pad >= hw."""
    max_tile = max(128, (max_tile // 128) * 128)
    hw128 = ((hw + 127) // 128) * 128          # lane-aligned size
    if hw128 <= max_tile:
        return hw128, hw128                    # single lane-dense tile
    best = 128
    t = 256
    while t <= max_tile:
        if hw128 % t == 0:
            best = t
        t += 128
    if best >= 2048:                            # big enough divisor: no extra padding
        return hw128, best
    tile = max_tile                             # pad up to a multiple of a big tile
    hw_pad = ((hw128 + tile - 1) // tile) * tile
    return hw_pad, tile


# ------------------------------------ wrapper ---------------------------------------

def feedforward_pallas(x_nchw, params, *, force_tiled=False, max_tile=16384):
    """x_nchw: (N, Cin, H, W) float32 -> (N, Cout, H, W) float32."""
    n, cin, h, w = x_nchw.shape
    w1 = params["w1"]                 # (Cout, Cin)
    w2 = params["w2"]                 # (Cout, Cout)
    cout = w1.shape[0]
    hw = h * w
    m_total = n * hw                  # true pixel count (padding excluded)

    hw_pad, tile = _plan_tiles(hw, max_tile)
    padded = hw_pad != hw
    num_t = hw_pad // tile

    x3 = x_nchw.reshape(n, cin, hw)   # free: NCHW is already (N, C, HW)
    if padded:
        x3 = jnp.pad(x3, ((0, 0), (0, 0), (0, hw_pad - hw)))

    fused_bytes = (n * cin + n * cout + 8 * cout) * hw_pad * 4
    use_fused = (not force_tiled) and (n <= 8) and (fused_bytes <= _FUSED_BYTES_CAP)

    if use_fused:
        # --- single fused kernel: x read from HBM once, BN folds done in-kernel ---
        gb = jnp.stack([params["gamma1"], params["beta1"],
                        params["gamma2"], params["beta2"]], axis=1)   # (Cout, 4)
        out = pl.pallas_call(
            _make_fused_kernel(n, hw, hw_pad, m_total),
            out_shape=jax.ShapeDtypeStruct((n, cout, hw_pad), jnp.float32),
            grid=(1,),
            in_specs=[
                pl.BlockSpec((n, cin, hw_pad), lambda g: (0, 0, 0)),
                pl.BlockSpec((cout, cin), lambda g: (0, 0)),
                pl.BlockSpec((cout, cout), lambda g: (0, 0)),
                pl.BlockSpec((cout, 4), lambda g: (0, 0)),
            ],
            out_specs=pl.BlockSpec((n, cout, hw_pad), lambda g: (0, 0, 0)),
            compiler_params=pltpu.CompilerParams(
                dimension_semantics=("arbitrary",),
                vmem_limit_bytes=_VMEM_LIMIT),
        )(x3, w1, w2, gb)
    else:
        # --- tiled 3-pass pipeline ---
        split = 2 if (num_t >= 2 and num_t % 2 == 0) else 1   # v7x: core-split of tile axis
        tps = num_t // split                                   # tiles per split

        x_stat_spec = pl.BlockSpec((None, cin, tile),
                                   lambda s, i, t: (i, 0, s * tps + t))
        w1_stat_spec = pl.BlockSpec((cout, cin), lambda s, i, t: (0, 0))
        w2_stat_spec = pl.BlockSpec((cout, cout), lambda s, i, t: (0, 0))
        bn1_stat_spec = pl.BlockSpec((cout, 2), lambda s, i, t: (0, 0))
        stat_spec = pl.BlockSpec((None, None, cout, 2),
                                 lambda s, i, t: (s, i, 0, 0))
        stat_shape = jax.ShapeDtypeStruct((split, n, cout, 2), jnp.float32)
        stats_grid = (split, n, tps)
        stats_params = pltpu.CompilerParams(
            dimension_semantics=("parallel", "parallel", "arbitrary"),
            vmem_limit_bytes=_VMEM_LIMIT)

        def fold_bn(stats, gamma, beta):
            # merge per-(split, batch) partial sums pairwise (more robust than one big sum)
            s = jnp.sum(stats[..., 0], axis=(0, 1))            # (Cout,)
            q = jnp.sum(stats[..., 1], axis=(0, 1))
            mean = s / m_total
            var = jnp.maximum(q / m_total - mean * mean, 0.0)   # biased var (training BN)
            # TODO(synk): one-pass variance can lose precision for extreme activation
            # statistics; a shifted/Welford merge of the partials would be safer.
            scale = gamma * jax.lax.rsqrt(var + BN_EPS)
            return scale, beta - mean * scale

        # pass 1: stats of h1 = W1 @ x
        stats1 = pl.pallas_call(
            _stats1_kernel,
            out_shape=stat_shape,
            grid=stats_grid,
            in_specs=[x_stat_spec, w1_stat_spec],
            out_specs=stat_spec,
            compiler_params=stats_params,
        )(x3, w1)
        scale1, shift1 = fold_bn(stats1, params["gamma1"], params["beta1"])
        bn1 = jnp.stack([scale1, shift1], axis=1)               # (Cout, 2)

        # pass 2: stats of h2 = W2 @ relu(BN1(h1))
        stats2 = pl.pallas_call(
            _make_stats2_kernel(hw, tile, tps, padded),
            out_shape=stat_shape,
            grid=stats_grid,
            in_specs=[x_stat_spec, w1_stat_spec, w2_stat_spec, bn1_stat_spec],
            out_specs=stat_spec,
            compiler_params=stats_params,
        )(x3, w1, w2, bn1)
        scale2, shift2 = fold_bn(stats2, params["gamma2"], params["beta2"])
        bn_all = jnp.stack([scale1, shift1, scale2, shift2], axis=1)   # (Cout, 4)

        # pass 3: apply both blocks, lane-dense (Cout, TILE) stores
        out = pl.pallas_call(
            _apply_kernel,
            out_shape=jax.ShapeDtypeStruct((n, cout, hw_pad), jnp.float32),
            grid=(n, num_t),
            in_specs=[
                pl.BlockSpec((None, cin, tile), lambda i, t: (i, 0, t)),
                pl.BlockSpec((cout, cin), lambda i, t: (0, 0)),
                pl.BlockSpec((cout, cout), lambda i, t: (0, 0)),
                pl.BlockSpec((cout, 4), lambda i, t: (0, 0)),
            ],
            out_specs=pl.BlockSpec((None, cout, tile), lambda i, t: (i, 0, t)),
            compiler_params=pltpu.CompilerParams(
                dimension_semantics=("parallel", "parallel"),
                vmem_limit_bytes=_VMEM_LIMIT),
        )(x3, w1, w2, bn_all)

    if padded:
        out = out[:, :, :hw]
    return out.reshape(n, cout, h, w)


# -------------------------------- params / reference --------------------------------

def init_params(key, cin, cout):
    """Synthetic parameters matching the PyTorch module shapes.

    conv1: Conv2d(cin, cout, k=1, bias=False)  -> weight (cout, cin, 1, 1)
    conv2: Conv2d(cout, cout, k=1, bias=False) -> weight (cout, cout, 1, 1)
    bn1/bn2: BatchNorm2d(cout) affine weight/bias of shape (cout,)
    """
    k1, k2, k3, k4 = jax.random.split(key, 4)
    w1 = jax.random.normal(k1, (cout, cin, 1, 1), jnp.float32) * (cin ** -0.5)
    w2 = jax.random.normal(k2, (cout, cout, 1, 1), jnp.float32) * (cout ** -0.5)
    gamma1 = 1.0 + 0.1 * jax.random.normal(k3, (cout,), jnp.float32)
    beta1 = 0.05 * jax.random.normal(k4, (cout,), jnp.float32)
    gamma2 = jnp.ones((cout,), jnp.float32)   # PyTorch BatchNorm2d default init
    beta2 = jnp.zeros((cout,), jnp.float32)
    return {
        "w1": w1[:, :, 0, 0],     # (Cout, Cin) — used directly, no transpose
        "w2": w2[:, :, 0, 0],     # (Cout, Cout)
        "gamma1": gamma1, "beta1": beta1,
        "gamma2": gamma2, "beta2": beta2,
    }


def feedforward_ref(x_nchw, params):
    """Pure-JAX reference (two-pass variance) for correctness checking."""
    def block(x, wt, gamma, beta):
        y = jnp.einsum("oi,nihw->nohw", wt, x)
        mean = jnp.mean(y, axis=(0, 2, 3), keepdims=True)
        var = jnp.mean((y - mean) ** 2, axis=(0, 2, 3), keepdims=True)
        y = (y - mean) * jax.lax.rsqrt(var + BN_EPS)
        y = y * gamma.reshape(1, -1, 1, 1) + beta.reshape(1, -1, 1, 1)
        return jnp.maximum(y, 0.0)

    x = block(x_nchw, params["w1"], params["gamma1"], params["beta1"])
    x = block(x, params["w2"], params["gamma2"], params["beta2"])
    return x


if __name__ == "__main__":
    key = jax.random.PRNGKey(0)
    kx, kp, kx2 = jax.random.split(key, 3)

    N, CIN, COUT, H, W = 2, 4, 8, 16, 16
    x = jax.random.normal(kx, (N, CIN, H, W), jnp.float32)
    params = init_params(kp, CIN, COUT)

    # Default path: fused single-kernel (x resident in VMEM).
    ff = jax.jit(feedforward_pallas)
    out = jax.block_until_ready(ff(x, params))
    ref = feedforward_ref(x, params)
    assert out.shape == (N, COUT, H, W)
    assert jnp.allclose(out, ref, atol=5e-4, rtol=5e-4), "fused path mismatch"

    # Also exercise the tiled 3-pass path (HW=400 not a multiple of 128 -> padding,
    # masked stats, 2-way core-split of the tile axis) at a small forced-tile size.
    H2, W2 = 20, 20
    x2 = jax.random.normal(kx2, (N, CIN, H2, W2), jnp.float32)
    ff_tiled = jax.jit(functools.partial(feedforward_pallas,
                                         force_tiled=True, max_tile=128))
    out2 = jax.block_until_ready(ff_tiled(x2, params))
    ref2 = feedforward_ref(x2, params)
    assert out2.shape == (N, COUT, H2, W2)
    assert jnp.allclose(out2, ref2, atol=5e-4, rtol=5e-4), "tiled path mismatch"

    print("KERNEL_OK")
</pallas_src>

<mosaic_0001>
module attributes {stable_mosaic.version = 11 : i64} {
  func.func @kernel(%arg0: i32, %arg1: memref<2x4x256xf32, #tpu.memory_space<vmem>>, %arg2: memref<8x4xf32, #tpu.memory_space<vmem>>, %arg3: memref<8x8xf32, #tpu.memory_space<vmem>>, %arg4: memref<8x4xf32, #tpu.memory_space<vmem>>, %arg5: memref<2x8x256xf32, #tpu.memory_space<vmem>>) attributes {dimension_semantics = [#tpu.dimension_semantics<arbitrary>], iteration_bounds = array<i64: 1>, scalar_prefetch = 0 : i64, scratch_operands = 0 : i64, tpu.core_type = #tpu.core_type<tc>, window_params = [{pipeline_mode = #tpu.pipeline_mode<synchronous>, transform_indices = @transform_0, window_bounds = array<i64: 2, 4, 256>}, {pipeline_mode = #tpu.pipeline_mode<synchronous>, transform_indices = @transform_1, window_bounds = array<i64: 8, 4>}, {pipeline_mode = #tpu.pipeline_mode<synchronous>, transform_indices = @transform_2, window_bounds = array<i64: 8, 8>}, {pipeline_mode = #tpu.pipeline_mode<synchronous>, transform_indices = @transform_3, window_bounds = array<i64: 8, 4>}, {pipeline_mode = #tpu.pipeline_mode<synchronous>, transform_indices = @transform_4, window_bounds = array<i64: 2, 8, 256>}]} {
    %c0 = arith.constant 0 : index
    %c0_0 = arith.constant 0 : index
    %0 = vector.load %arg2[%c0, %c0_0] : memref<8x4xf32, #tpu.memory_space<vmem>>, vector<8x4xf32>
    %c0_1 = arith.constant 0 : index
    %c0_2 = arith.constant 0 : index
    %1 = vector.load %arg3[%c0_1, %c0_2] : memref<8x8xf32, #tpu.memory_space<vmem>>, vector<8x8xf32>
    %cst = arith.constant 0.000000e+00 : f32
    %2 = vector.broadcast %cst : f32 to vector<8x1xf32>
    %cst_3 = arith.constant 0.000000e+00 : f32
    %3 = vector.broadcast %cst_3 : f32 to vector<8x1xf32>
    %c0_4 = arith.constant 0 : index
    %c0_5 = arith.constant 0 : index
    %c0_6 = arith.constant 0 : index
    %4 = vector.load %arg1[%c0_4, %c0_5, %c0_6] : memref<2x4x256xf32, #tpu.memory_space<vmem>>, vector<1x4x256xf32>
    %5 = vector.shape_cast %4 : vector<1x4x256xf32> to vector<4x256xf32>
    %6 = vector.extract_strided_slice %0 {offsets = [0, 0], sizes = [8, 1], strides = [1, 1]} : vector<8x4xf32> to vector<8x1xf32>
    %7 = vector.extract_strided_slice %5 {offsets = [0, 0], sizes = [1, 256], strides = [1, 1]} : vector<4x256xf32> to vector<1x256xf32>
    %8 = vector.broadcast %6 : vector<8x1xf32> to vector<8x256xf32>
    %9 = vector.broadcast %7 : vector<1x256xf32> to vector<8x256xf32>
    %10 = arith.mulf %8, %9 : vector<8x256xf32>
    %11 = vector.extract_strided_slice %0 {offsets = [0, 1], sizes = [8, 1], strides = [1, 1]} : vector<8x4xf32> to vector<8x1xf32>
    %12 = vector.extract_strided_slice %5 {offsets = [1, 0], sizes = [1, 256], strides = [1, 1]} : vector<4x256xf32> to vector<1x256xf32>
    %13 = vector.broadcast %11 : vector<8x1xf32> to vector<8x256xf32>
    %14 = vector.broadcast %12 : vector<1x256xf32> to vector<8x256xf32>
    %15 = arith.mulf %13, %14 : vector<8x256xf32>
    %16 = arith.addf %10, %15 : vector<8x256xf32>
    %17 = vector.extract_strided_slice %0 {offsets = [0, 2], sizes = [8, 1], strides = [1, 1]} : vector<8x4xf32> to vector<8x1xf32>
    %18 = vector.extract_strided_slice %5 {offsets = [2, 0], sizes = [1, 256], strides = [1, 1]} : vector<4x256xf32> to vector<1x256xf32>
    %19 = vector.broadcast %17 : vector<8x1xf32> to vector<8x256xf32>
    %20 = vector.broadcast %18 : vector<1x256xf32> to vector<8x256xf32>
    %21 = arith.mulf %19, %20 : vector<8x256xf32>
    %22 = arith.addf %16, %21 : vector<8x256xf32>
    %23 = vector.extract_strided_slice %0 {offsets = [0, 3], sizes = [8, 1], strides = [1, 1]} : vector<8x4xf32> to vector<8x1xf32>
    %24 = vector.extract_strided_slice %5 {offsets = [3, 0], sizes = [1, 256], strides = [1, 1]} : vector<4x256xf32> to vector<1x256xf32>
    %25 = vector.broadcast %23 : vector<8x1xf32> to vector<8x256xf32>
    %26 = vector.broadcast %24 : vector<1x256xf32> to vector<8x256xf32>
    %27 = arith.mulf %25, %26 : vector<8x256xf32>
    %28 = arith.addf %22, %27 : vector<8x256xf32>
    %cst_7 = arith.constant dense<0.000000e+00> : vector<8xf32>
    %29 = vector.multi_reduction <add>, %28, %cst_7 [1] : vector<8x256xf32> to vector<8xf32>
    %30 = vector.shape_cast %29 : vector<8xf32> to vector<8x1xf32>
    %31 = arith.addf %2, %30 : vector<8x1xf32>
    %32 = arith.mulf %28, %28 : vector<8x256xf32>
    %cst_8 = arith.constant dense<0.000000e+00> : vector<8xf32>
    %33 = vector.multi_reduction <add>, %32, %cst_8 [1] : vector<8x256xf32> to vector<8xf32>
    %34 = vector.shape_cast %33 : vector<8xf32> to vector<8x1xf32>
    %35 = arith.addf %3, %34 : vector<8x1xf32>
    %c1 = arith.constant 1 : index
    %c0_9 = arith.constant 0 : index
    %c0_10 = arith.constant 0 : index
    %36 = vector.load %arg1[%c1, %c0_9, %c0_10] : memref<2x4x256xf32, #tpu.memory_space<vmem>>, vector<1x4x256xf32>
    %37 = vector.shape_cast %36 : vector<1x4x256xf32> to vector<4x256xf32>
    %38 = vector.extract_strided_slice %0 {offsets = [0, 0], sizes = [8, 1], strides = [1, 1]} : vector<8x4xf32> to vector<8x1xf32>
    %39 = vector.extract_strided_slice %37 {offsets = [0, 0], sizes = [1, 256], strides = [1, 1]} : vector<4x256xf32> to vector<1x256xf32>
    %40 = vector.broadcast %38 : vector<8x1xf32> to vector<8x256xf32>
    %41 = vector.broadcast %39 : vector<1x256xf32> to vector<8x256xf32>
    %42 = arith.mulf %40, %41 : vector<8x256xf32>
    %43 = vector.extract_strided_slice %0 {offsets = [0, 1], sizes = [8, 1], strides = [1, 1]} : vector<8x4xf32> to vector<8x1xf32>
    %44 = vector.extract_strided_slice %37 {offsets = [1, 0], sizes = [1, 256], strides = [1, 1]} : vector<4x256xf32> to vector<1x256xf32>
    %45 = vector.broadcast %43 : vector<8x1xf32> to vector<8x256xf32>
    %46 = vector.broadcast %44 : vector<1x256xf32> to vector<8x256xf32>
    %47 = arith.mulf %45, %46 : vector<8x256xf32>
    %48 = arith.addf %42, %47 : vector<8x256xf32>
    %49 = vector.extract_strided_slice %0 {offsets = [0, 2], sizes = [8, 1], strides = [1, 1]} : vector<8x4xf32> to vector<8x1xf32>
    %50 = vector.extract_strided_slice %37 {offsets = [2, 0], sizes = [1, 256], strides = [1, 1]} : vector<4x256xf32> to vector<1x256xf32>
    %51 = vector.broadcast %49 : vector<8x1xf32> to vector<8x256xf32>
    %52 = vector.broadcast %50 : vector<1x256xf32> to vector<8x256xf32>
    %53 = arith.mulf %51, %52 : vector<8x256xf32>
    %54 = arith.addf %48, %53 : vector<8x256xf32>
    %55 = vector.extract_strided_slice %0 {offsets = [0, 3], sizes = [8, 1], strides = [1, 1]} : vector<8x4xf32> to vector<8x1xf32>
    %56 = vector.extract_strided_slice %37 {offsets = [3, 0], sizes = [1, 256], strides = [1, 1]} : vector<4x256xf32> to vector<1x256xf32>
    %57 = vector.broadcast %55 : vector<8x1xf32> to vector<8x256xf32>
    %58 = vector.broadcast %56 : vector<1x256xf32> to vector<8x256xf32>
    %59 = arith.mulf %57, %58 : vector<8x256xf32>
    %60 = arith.addf %54, %59 : vector<8x256xf32>
    %cst_11 = arith.constant dense<0.000000e+00> : vector<8xf32>
    %61 = vector.multi_reduction <add>, %60, %cst_11 [1] : vector<8x256xf32> to vector<8xf32>
    %62 = vector.shape_cast %61 : vector<8xf32> to vector<8x1xf32>
    %63 = arith.addf %31, %62 : vector<8x1xf32>
    %64 = arith.mulf %60, %60 : vector<8x256xf32>
    %cst_12 = arith.constant dense<0.000000e+00> : vector<8xf32>
    %65 = vector.multi_reduction <add>, %64, %cst_12 [1] : vector<8x256xf32> to vector<8xf32>
    %66 = vector.shape_cast %65 : vector<8xf32> to vector<8x1xf32>
    %67 = arith.addf %35, %66 : vector<8x1xf32>
    %c0_13 = arith.constant 0 : index
    %c0_14 = arith.constant 0 : index
    %68 = vector.load %arg4[%c0_13, %c0_14] : memref<8x4xf32, #tpu.memory_space<vmem>>, vector<8x1xf32>
    %c0_15 = arith.constant 0 : index
    %c1_16 = arith.constant 1 : index
    %69 = vector.load %arg4[%c0_15, %c1_16] : memref<8x4xf32, #tpu.memory_space<vmem>>, vector<8x1xf32>
    %cst_17 = arith.constant 0.001953125 : f32
    %70 = vector.broadcast %cst_17 : f32 to vector<8x1xf32>
    %71 = arith.mulf %63, %70 : vector<8x1xf32>
    %cst_18 = arith.constant 0.001953125 : f32
    %72 = vector.broadcast %cst_18 : f32 to vector<8x1xf32>
    %73 = arith.mulf %67, %72 : vector<8x1xf32>
    %74 = arith.mulf %71, %71 : vector<8x1xf32>
    %75 = arith.subf %73, %74 : vector<8x1xf32>
    %cst_19 = arith.constant 0.000000e+00 : f32
    %76 = vector.broadcast %cst_19 : f32 to vector<8x1xf32>
    %77 = arith.maximumf %75, %76 : vector<8x1xf32>
    %cst_20 = arith.constant 9.99999974E-6 : f32
    %78 = vector.broadcast %cst_20 : f32 to vector<8x1xf32>
    %79 = arith.addf %77, %78 : vector<8x1xf32>
    %80 = math.rsqrt %79 : vector<8x1xf32>
    %81 = arith.mulf %68, %80 : vector<8x1xf32>
    %82 = arith.mulf %71, %81 : vector<8x1xf32>
    %83 = arith.subf %69, %82 : vector<8x1xf32>
    %cst_21 = arith.constant 0.000000e+00 : f32
    %84 = vector.broadcast %cst_21 : f32 to vector<8x1xf32>
    %cst_22 = arith.constant 0.000000e+00 : f32
    %85 = vector.broadcast %cst_22 : f32 to vector<8x1xf32>
    %c0_23 = arith.constant 0 : index
    %c0_24 = arith.constant 0 : index
    %c0_25 = arith.constant 0 : index
    %86 = vector.load %arg1[%c0_23, %c0_24, %c0_25] : memref<2x4x256xf32, #tpu.memory_space<vmem>>, vector<1x4x256xf32>
    %87 = vector.shape_cast %86 : vector<1x4x256xf32> to vector<4x256xf32>
    %88 = vector.extract_strided_slice %0 {offsets = [0, 0], sizes = [8, 1], strides = [1, 1]} : vector<8x4xf32> to vector<8x1xf32>
    %89 = vector.extract_strided_slice %87 {offsets = [0, 0], sizes = [1, 256], strides = [1, 1]} : vector<4x256xf32> to vector<1x256xf32>
    %90 = vector.broadcast %88 : vector<8x1xf32> to vector<8x256xf32>
    %91 = vector.broadcast %89 : vector<1x256xf32> to vector<8x256xf32>
    %92 = arith.mulf %90, %91 : vector<8x256xf32>
    %93 = vector.extract_strided_slice %0 {offsets = [0, 1], sizes = [8, 1], strides = [1, 1]} : vector<8x4xf32> to vector<8x1xf32>
    %94 = vector.extract_strided_slice %87 {offsets = [1, 0], sizes = [1, 256], strides = [1, 1]} : vector<4x256xf32> to vector<1x256xf32>
    %95 = vector.broadcast %93 : vector<8x1xf32> to vector<8x256xf32>
    %96 = vector.broadcast %94 : vector<1x256xf32> to vector<8x256xf32>
    %97 = arith.mulf %95, %96 : vector<8x256xf32>
    %98 = arith.addf %92, %97 : vector<8x256xf32>
    %99 = vector.extract_strided_slice %0 {offsets = [0, 2], sizes = [8, 1], strides = [1, 1]} : vector<8x4xf32> to vector<8x1xf32>
    %100 = vector.extract_strided_slice %87 {offsets = [2, 0], sizes = [1, 256], strides = [1, 1]} : vector<4x256xf32> to vector<1x256xf32>
    %101 = vector.broadcast %99 : vector<8x1xf32> to vector<8x256xf32>
    %102 = vector.broadcast %100 : vector<1x256xf32> to vector<8x256xf32>
    %103 = arith.mulf %101, %102 : vector<8x256xf32>
    %104 = arith.addf %98, %103 : vector<8x256xf32>
    %105 = vector.extract_strided_slice %0 {offsets = [0, 3], sizes = [8, 1], strides = [1, 1]} : vector<8x4xf32> to vector<8x1xf32>
    %106 = vector.extract_strided_slice %87 {offsets = [3, 0], sizes = [1, 256], strides = [1, 1]} : vector<4x256xf32> to vector<1x256xf32>
    %107 = vector.broadcast %105 : vector<8x1xf32> to vector<8x256xf32>
    %108 = vector.broadcast %106 : vector<1x256xf32> to vector<8x256xf32>
    %109 = arith.mulf %107, %108 : vector<8x256xf32>
    %110 = arith.addf %104, %109 : vector<8x256xf32>
    %111 = vector.broadcast %81 : vector<8x1xf32> to vector<8x256xf32>
    %112 = arith.mulf %110, %111 : vector<8x256xf32>
    %113 = vector.broadcast %83 : vector<8x1xf32> to vector<8x256xf32>
    %114 = arith.addf %112, %113 : vector<8x256xf32>
    %cst_26 = arith.constant 0.000000e+00 : f32
    %115 = vector.broadcast %cst_26 : f32 to vector<8x256xf32>
    %116 = arith.maximumf %114, %115 : vector<8x256xf32>
    %117 = vector.extract_strided_slice %1 {offsets = [0, 0], sizes = [8, 1], strides = [1, 1]} : vector<8x8xf32> to vector<8x1xf32>
    %118 = vector.extract_strided_slice %116 {offsets = [0, 0], sizes = [1, 256], strides = [1, 1]} : vector<8x256xf32> to vector<1x256xf32>
    %119 = vector.broadcast %117 : vector<8x1xf32> to vector<8x256xf32>
    %120 = vector.broadcast %118 : vector<1x256xf32> to vector<8x256xf32>
    %121 = arith.mulf %119, %120 : vector<8x256xf32>
    %122 = vector.extract_strided_slice %1 {offsets = [0, 1], sizes = [8, 1], strides = [1, 1]} : vector<8x8xf32> to vector<8x1xf32>
    %123 = vector.extract_strided_slice %116 {offsets = [1, 0], sizes = [1, 256], strides = [1, 1]} : vector<8x256xf32> to vector<1x256xf32>
    %124 = vector.broadcast %122 : vector<8x1xf32> to vector<8x256xf32>
    %125 = vector.broadcast %123 : vector<1x256xf32> to vector<8x256xf32>
    %126 = arith.mulf %124, %125 : vector<8x256xf32>
    %127 = arith.addf %121, %126 : vector<8x256xf32>
    %128 = vector.extract_strided_slice %1 {offsets = [0, 2], sizes = [8, 1], strides = [1, 1]} : vector<8x8xf32> to vector<8x1xf32>
    %129 = vector.extract_strided_slice %116 {offsets = [2, 0], sizes = [1, 256], strides = [1, 1]} : vector<8x256xf32> to vector<1x256xf32>
    %130 = vector.broadcast %128 : vector<8x1xf32> to vector<8x256xf32>
    %131 = vector.broadcast %129 : vector<1x256xf32> to vector<8x256xf32>
    %132 = arith.mulf %130, %131 : vector<8x256xf32>
    %133 = arith.addf %127, %132 : vector<8x256xf32>
    %134 = vector.extract_strided_slice %1 {offsets = [0, 3], sizes = [8, 1], strides = [1, 1]} : vector<8x8xf32> to vector<8x1xf32>
    %135 = vector.extract_strided_slice %116 {offsets = [3, 0], sizes = [1, 256], strides = [1, 1]} : vector<8x256xf32> to vector<1x256xf32>
    %136 = vector.broadcast %134 : vector<8x1xf32> to vector<8x256xf32>
    %137 = vector.broadcast %135 : vector<1x256xf32> to vector<8x256xf32>
    %138 = arith.mulf %136, %137 : vector<8x256xf32>
    %139 = arith.addf %133, %138 : vector<8x256xf32>
    %140 = vector.extract_strided_slice %1 {offsets = [0, 4], sizes = [8, 1], strides = [1, 1]} : vector<8x8xf32> to vector<8x1xf32>
    %141 = vector.extract_strided_slice %116 {offsets = [4, 0], sizes = [1, 256], strides = [1, 1]} : vector<8x256xf32> to vector<1x256xf32>
    %142 = vector.broadcast %140 : vector<8x1xf32> to vector<8x256xf32>
    %143 = vector.broadcast %141 : vector<1x256xf32> to vector<8x256xf32>
    %144 = arith.mulf %142, %143 : vector<8x256xf32>
    %145 = arith.addf %139, %144 : vector<8x256xf32>
    %146 = vector.extract_strided_slice %1 {offsets = [0, 5], sizes = [8, 1], strides = [1, 1]} : vector<8x8xf32> to vector<8x1xf32>
    %147 = vector.extract_strided_slice %116 {offsets = [5, 0], sizes = [1, 256], strides = [1, 1]} : vector<8x256xf32> to vector<1x256xf32>
    %148 = vector.broadcast %146 : vector<8x1xf32> to vector<8x256xf32>
    %149 = vector.broadcast %147 : vector<1x256xf32> to vector<8x256xf32>
    %150 = arith.mulf %148, %149 : vector<8x256xf32>
    %151 = arith.addf %145, %150 : vector<8x256xf32>
    %152 = vector.extract_strided_slice %1 {offsets = [0, 6], sizes = [8, 1], strides = [1, 1]} : vector<8x8xf32> to vector<8x1xf32>
    %153 = vector.extract_strided_slice %116 {offsets = [6, 0], sizes = [1, 256], strides = [1, 1]} : vector<8x256xf32> to vector<1x256xf32>
    %154 = vector.broadcast %152 : vector<8x1xf32> to vector<8x256xf32>
    %155 = vector.broadcast %153 : vector<1x256xf32> to vector<8x256xf32>
    %156 = arith.mulf %154, %155 : vector<8x256xf32>
    %157 = arith.addf %151, %156 : vector<8x256xf32>
    %158 = vector.extract_strided_slice %1 {offsets = [0, 7], sizes = [8, 1], strides = [1, 1]} : vector<8x8xf32> to vector<8x1xf32>
    %159 = vector.extract_strided_slice %116 {offsets = [7, 0], sizes = [1, 256], strides = [1, 1]} : vector<8x256xf32> to vector<1x256xf32>
    %160 = vector.broadcast %158 : vector<8x1xf32> to vector<8x256xf32>
    %161 = vector.broadcast %159 : vector<1x256xf32> to vector<8x256xf32>
    %162 = arith.mulf %160, %161 : vector<8x256xf32>
    %163 = arith.addf %157, %162 : vector<8x256xf32>
    %cst_27 = arith.constant dense<0.000000e+00> : vector<8xf32>
    %164 = vector.multi_reduction <add>, %163, %cst_27 [1] : vector<8x256xf32> to vector<8xf32>
    %165 = vector.shape_cast %164 : vector<8xf32> to vector<8x1xf32>
    %166 = arith.addf %84, %165 : vector<8x1xf32>
    %167 = arith.mulf %163, %163 : vector<8x256xf32>
    %cst_28 = arith.constant dense<0.000000e+00> : vector<8xf32>
    %168 = vector.multi_reduction <add>, %167, %cst_28 [1] : vector<8x256xf32> to vector<8xf32>
    %169 = vector.shape_cast %168 : vector<8xf32> to vector<8x1xf32>
    %170 = arith.addf %85, %169 : vector<8x1xf32>
    %c1_29 = arith.constant 1 : index
    %c0_30 = arith.constant 0 : index
    %c0_31 = arith.constant 0 : index
    %171 = vector.load %arg1[%c1_29, %c0_30, %c0_31] : memref<2x4x256xf32, #tpu.memory_space<vmem>>, vector<1x4x256xf32>
    %172 = vector.shape_cast %171 : vector<1x4x256xf32> to vector<4x256xf32>
    %173 = vector.extract_strided_slice %0 {offsets = [0, 0], sizes = [8, 1], strides = [1, 1]} : vector<8x4xf32> to vector<8x1xf32>
    %174 = vector.extract_strided_slice %172 {offsets = [0, 0], sizes = [1, 256], strides = [1, 1]} : vector<4x256xf32> to vector<1x256xf32>
    %175 = vector.broadcast %173 : vector<8x1xf32> to vector<8x256xf32>
    %176 = vector.broadcast %174 : vector<1x256xf32> to vector<8x256xf32>
    %177 = arith.mulf %175, %176 : vector<8x256xf32>
    %178 = vector.extract_strided_slice %0 {offsets = [0, 1], sizes = [8, 1], strides = [1, 1]} : vector<8x4xf32> to vector<8x1xf32>
    %179 = vector.extract_strided_slice %172 {offsets = [1, 0], sizes = [1, 256], strides = [1, 1]} : vector<4x256xf32> to vector<1x256xf32>
    %180 = vector.broadcast %178 : vector<8x1xf32> to vector<8x256xf32>
    %181 = vector.broadcast %179 : vector<1x256xf32> to vector<8x256xf32>
    %182 = arith.mulf %180, %181 : vector<8x256xf32>
    %183 = arith.addf %177, %182 : vector<8x256xf32>
    %184 = vector.extract_strided_slice %0 {offsets = [0, 2], sizes = [8, 1], strides = [1, 1]} : vector<8x4xf32> to vector<8x1xf32>
    %185 = vector.extract_strided_slice %172 {offsets = [2, 0], sizes = [1, 256], strides = [1, 1]} : vector<4x256xf32> to vector<1x256xf32>
    %186 = vector.broadcast %184 : vector<8x1xf32> to vector<8x256xf32>
    %187 = vector.broadcast %185 : vector<1x256xf32> to vector<8x256xf32>
    %188 = arith.mulf %186, %187 : vector<8x256xf32>
    %189 = arith.addf %183, %188 : vector<8x256xf32>
    %190 = vector.extract_strided_slice %0 {offsets = [0, 3], sizes = [8, 1], strides = [1, 1]} : vector<8x4xf32> to vector<8x1xf32>
    %191 = vector.extract_strided_slice %172 {offsets = [3, 0], sizes = [1, 256], strides = [1, 1]} : vector<4x256xf32> to vector<1x256xf32>
    %192 = vector.broadcast %190 : vector<8x1xf32> to vector<8x256xf32>
    %193 = vector.broadcast %191 : vector<1x256xf32> to vector<8x256xf32>
    %194 = arith.mulf %192, %193 : vector<8x256xf32>
    %195 = arith.addf %189, %194 : vector<8x256xf32>
    %196 = vector.broadcast %81 : vector<8x1xf32> to vector<8x256xf32>
    %197 = arith.mulf %195, %196 : vector<8x256xf32>
    %198 = vector.broadcast %83 : vector<8x1xf32> to vector<8x256xf32>
    %199 = arith.addf %197, %198 : vector<8x256xf32>
    %cst_32 = arith.constant 0.000000e+00 : f32
    %200 = vector.broadcast %cst_32 : f32 to vector<8x256xf32>
    %201 = arith.maximumf %199, %200 : vector<8x256xf32>
    %202 = vector.extract_strided_slice %1 {offsets = [0, 0], sizes = [8, 1], strides = [1, 1]} : vector<8x8xf32> to vector<8x1xf32>
    %203 = vector.extract_strided_slice %201 {offsets = [0, 0], sizes = [1, 256], strides = [1, 1]} : vector<8x256xf32> to vector<1x256xf32>
    %204 = vector.broadcast %202 : vector<8x1xf32> to vector<8x256xf32>
    %205 = vector.broadcast %203 : vector<1x256xf32> to vector<8x256xf32>
    %206 = arith.mulf %204, %205 : vector<8x256xf32>
    %207 = vector.extract_strided_slice %1 {offsets = [0, 1], sizes = [8, 1], strides = [1, 1]} : vector<8x8xf32> to vector<8x1xf32>
    %208 = vector.extract_strided_slice %201 {offsets = [1, 0], sizes = [1, 256], strides = [1, 1]} : vector<8x256xf32> to vector<1x256xf32>
    %209 = vector.broadcast %207 : vector<8x1xf32> to vector<8x256xf32>
    %210 = vector.broadcast %208 : vector<1x256xf32> to vector<8x256xf32>
    %211 = arith.mulf %209, %210 : vector<8x256xf32>
    %212 = arith.addf %206, %211 : vector<8x256xf32>
    %213 = vector.extract_strided_slice %1 {offsets = [0, 2], sizes = [8, 1], strides = [1, 1]} : vector<8x8xf32> to vector<8x1xf32>
    %214 = vector.extract_strided_slice %201 {offsets = [2, 0], sizes = [1, 256], strides = [1, 1]} : vector<8x256xf32> to vector<1x256xf32>
    %215 = vector.broadcast %213 : vector<8x1xf32> to vector<8x256xf32>
    %216 = vector.broadcast %214 : vector<1x256xf32> to vector<8x256xf32>
    %217 = arith.mulf %215, %216 : vector<8x256xf32>
    %218 = arith.addf %212, %217 : vector<8x256xf32>
    %219 = vector.extract_strided_slice %1 {offsets = [0, 3], sizes = [8, 1], strides = [1, 1]} : vector<8x8xf32> to vector<8x1xf32>
    %220 = vector.extract_strided_slice %201 {offsets = [3, 0], sizes = [1, 256], strides = [1, 1]} : vector<8x256xf32> to vector<1x256xf32>
    %221 = vector.broadcast %219 : vector<8x1xf32> to vector<8x256xf32>
    %222 = vector.broadcast %220 : vector<1x256xf32> to vector<8x256xf32>
    %223 = arith.mulf %221, %222 : vector<8x256xf32>
    %224 = arith.addf %218, %223 : vector<8x256xf32>
    %225 = vector.extract_strided_slice %1 {offsets = [0, 4], sizes = [8, 1], strides = [1, 1]} : vector<8x8xf32> to vector<8x1xf32>
    %226 = vector.extract_strided_slice %201 {offsets = [4, 0], sizes = [1, 256], strides = [1, 1]} : vector<8x256xf32> to vector<1x256xf32>
    %227 = vector.broadcast %225 : vector<8x1xf32> to vector<8x256xf32>
    %228 = vector.broadcast %226 : vector<1x256xf32> to vector<8x256xf32>
    %229 = arith.mulf %227, %228 : vector<8x256xf32>
    %230 = arith.addf %224, %229 : vector<8x256xf32>
    %231 = vector.extract_strided_slice %1 {offsets = [0, 5], sizes = [8, 1], strides = [1, 1]} : vector<8x8xf32> to vector<8x1xf32>
    %232 = vector.extract_strided_slice %201 {offsets = [5, 0], sizes = [1, 256], strides = [1, 1]} : vector<8x256xf32> to vector<1x256xf32>
    %233 = vector.broadcast %231 : vector<8x1xf32> to vector<8x256xf32>
    %234 = vector.broadcast %232 : vector<1x256xf32> to vector<8x256xf32>
    %235 = arith.mulf %233, %234 : vector<8x256xf32>
    %236 = arith.addf %230, %235 : vector<8x256xf32>
    %237 = vector.extract_strided_slice %1 {offsets = [0, 6], sizes = [8, 1], strides = [1, 1]} : vector<8x8xf32> to vector<8x1xf32>
    %238 = vector.extract_strided_slice %201 {offsets = [6, 0], sizes = [1, 256], strides = [1, 1]} : vector<8x256xf32> to vector<1x256xf32>
    %239 = vector.broadcast %237 : vector<8x1xf32> to vector<8x256xf32>
    %240 = vector.broadcast %238 : vector<1x256xf32> to vector<8x256xf32>
    %241 = arith.mulf %239, %240 : vector<8x256xf32>
    %242 = arith.addf %236, %241 : vector<8x256xf32>
    %243 = vector.extract_strided_slice %1 {offsets = [0, 7], sizes = [8, 1], strides = [1, 1]} : vector<8x8xf32> to vector<8x1xf32>
    %244 = vector.extract_strided_slice %201 {offsets = [7, 0], sizes = [1, 256], strides = [1, 1]} : vector<8x256xf32> to vector<1x256xf32>
    %245 = vector.broadcast %243 : vector<8x1xf32> to vector<8x256xf32>
    %246 = vector.broadcast %244 : vector<1x256xf32> to vector<8x256xf32>
    %247 = arith.mulf %245, %246 : vector<8x256xf32>
    %248 = arith.addf %242, %247 : vector<8x256xf32>
    %cst_33 = arith.constant dense<0.000000e+00> : vector<8xf32>
    %249 = vector.multi_reduction <add>, %248, %cst_33 [1] : vector<8x256xf32> to vector<8xf32>
    %250 = vector.shape_cast %249 : vector<8xf32> to vector<8x1xf32>
    %251 = arith.addf %166, %250 : vector<8x1xf32>
    %252 = arith.mulf %248, %248 : vector<8x256xf32>
    %cst_34 = arith.constant dense<0.000000e+00> : vector<8xf32>
    %253 = vector.multi_reduction <add>, %252, %cst_34 [1] : vector<8x256xf32> to vector<8xf32>
    %254 = vector.shape_cast %253 : vector<8xf32> to vector<8x1xf32>
    %255 = arith.addf %170, %254 : vector<8x1xf32>
    %c0_35 = arith.constant 0 : index
    %c2 = arith.constant 2 : index
    %256 = vector.load %arg4[%c0_35, %c2] : memref<8x4xf32, #tpu.memory_space<vmem>>, vector<8x1xf32>
    %c0_36 = arith.constant 0 : index
    %c3 = arith.constant 3 : index
    %257 = vector.load %arg4[%c0_36, %c3] : memref<8x4xf32, #tpu.memory_space<vmem>>, vector<8x1xf32>
    %cst_37 = arith.constant 0.001953125 : f32
    %258 = vector.broadcast %cst_37 : f32 to vector<8x1xf32>
    %259 = arith.mulf %251, %258 : vector<8x1xf32>
    %cst_38 = arith.constant 0.001953125 : f32
    %260 = vector.broadcast %cst_38 : f32 to vector<8x1xf32>
    %261 = arith.mulf %255, %260 : vector<8x1xf32>
    %262 = arith.mulf %259, %259 : vector<8x1xf32>
    %263 = arith.subf %261, %262 : vector<8x1xf32>
    %cst_39 = arith.constant 0.000000e+00 : f32
    %264 = vector.broadcast %cst_39 : f32 to vector<8x1xf32>
    %265 = arith.maximumf %263, %264 : vector<8x1xf32>
    %cst_40 = arith.constant 9.99999974E-6 : f32
    %266 = vector.broadcast %cst_40 : f32 to vector<8x1xf32>
    %267 = arith.addf %265, %266 : vector<8x1xf32>
    %268 = math.rsqrt %267 : vector<8x1xf32>
    %269 = arith.mulf %256, %268 : vector<8x1xf32>
    %270 = arith.mulf %259, %269 : vector<8x1xf32>
    %271 = arith.subf %257, %270 : vector<8x1xf32>
    %c0_41 = arith.constant 0 : index
    %c0_42 = arith.constant 0 : index
    %c0_43 = arith.constant 0 : index
    %272 = vector.load %arg1[%c0_41, %c0_42, %c0_43] : memref<2x4x256xf32, #tpu.memory_space<vmem>>, vector<1x4x256xf32>
    %273 = vector.shape_cast %272 : vector<1x4x256xf32> to vector<4x256xf32>
    %274 = vector.extract_strided_slice %0 {offsets = [0, 0], sizes = [8, 1], strides = [1, 1]} : vector<8x4xf32> to vector<8x1xf32>
    %275 = vector.extract_strided_slice %273 {offsets = [0, 0], sizes = [1, 256], strides = [1, 1]} : vector<4x256xf32> to vector<1x256xf32>
    %276 = vector.broadcast %274 : vector<8x1xf32> to vector<8x256xf32>
    %277 = vector.broadcast %275 : vector<1x256xf32> to vector<8x256xf32>
    %278 = arith.mulf %276, %277 : vector<8x256xf32>
    %279 = vector.extract_strided_slice %0 {offsets = [0, 1], sizes = [8, 1], strides = [1, 1]} : vector<8x4xf32> to vector<8x1xf32>
    %280 = vector.extract_strided_slice %273 {offsets = [1, 0], sizes = [1, 256], strides = [1, 1]} : vector<4x256xf32> to vector<1x256xf32>
    %281 = vector.broadcast %279 : vector<8x1xf32> to vector<8x256xf32>
    %282 = vector.broadcast %280 : vector<1x256xf32> to vector<8x256xf32>
    %283 = arith.mulf %281, %282 : vector<8x256xf32>
    %284 = arith.addf %278, %283 : vector<8x256xf32>
    %285 = vector.extract_strided_slice %0 {offsets = [0, 2], sizes = [8, 1], strides = [1, 1]} : vector<8x4xf32> to vector<8x1xf32>
    %286 = vector.extract_strided_slice %273 {offsets = [2, 0], sizes = [1, 256], strides = [1, 1]} : vector<4x256xf32> to vector<1x256xf32>
    %287 = vector.broadcast %285 : vector<8x1xf32> to vector<8x256xf32>
    %288 = vector.broadcast %286 : vector<1x256xf32> to vector<8x256xf32>
    %289 = arith.mulf %287, %288 : vector<8x256xf32>
    %290 = arith.addf %284, %289 : vector<8x256xf32>
    %291 = vector.extract_strided_slice %0 {offsets = [0, 3], sizes = [8, 1], strides = [1, 1]} : vector<8x4xf32> to vector<8x1xf32>
    %292 = vector.extract_strided_slice %273 {offsets = [3, 0], sizes = [1, 256], strides = [1, 1]} : vector<4x256xf32> to vector<1x256xf32>
    %293 = vector.broadcast %291 : vector<8x1xf32> to vector<8x256xf32>
    %294 = vector.broadcast %292 : vector<1x256xf32> to vector<8x256xf32>
    %295 = arith.mulf %293, %294 : vector<8x256xf32>
    %296 = arith.addf %290, %295 : vector<8x256xf32>
    %297 = vector.broadcast %81 : vector<8x1xf32> to vector<8x256xf32>
    %298 = arith.mulf %296, %297 : vector<8x256xf32>
    %299 = vector.broadcast %83 : vector<8x1xf32> to vector<8x256xf32>
    %300 = arith.addf %298, %299 : vector<8x256xf32>
    %cst_44 = arith.constant 0.000000e+00 : f32
    %301 = vector.broadcast %cst_44 : f32 to vector<8x256xf32>
    %302 = arith.maximumf %300, %301 : vector<8x256xf32>
    %303 = vector.extract_strided_slice %1 {offsets = [0, 0], sizes = [8, 1], strides = [1, 1]} : vector<8x8xf32> to vector<8x1xf32>
    %304 = vector.extract_strided_slice %302 {offsets = [0, 0], sizes = [1, 256], strides = [1, 1]} : vector<8x256xf32> to vector<1x256xf32>
    %305 = vector.broadcast %303 : vector<8x1xf32> to vector<8x256xf32>
    %306 = vector.broadcast %304 : vector<1x256xf32> to vector<8x256xf32>
    %307 = arith.mulf %305, %306 : vector<8x256xf32>
    %308 = vector.extract_strided_slice %1 {offsets = [0, 1], sizes = [8, 1], strides = [1, 1]} : vector<8x8xf32> to vector<8x1xf32>
    %309 = vector.extract_strided_slice %302 {offsets = [1, 0], sizes = [1, 256], strides = [1, 1]} : vector<8x256xf32> to vector<1x256xf32>
    %310 = vector.broadcast %308 : vector<8x1xf32> to vector<8x256xf32>
    %311 = vector.broadcast %309 : vector<1x256xf32> to vector<8x256xf32>
    %312 = arith.mulf %310, %311 : vector<8x256xf32>
    %313 = arith.addf %307, %312 : vector<8x256xf32>
    %314 = vector.extract_strided_slice %1 {offsets = [0, 2], sizes = [8, 1], strides = [1, 1]} : vector<8x8xf32> to vector<8x1xf32>
    %315 = vector.extract_strided_slice %302 {offsets = [2, 0], sizes = [1, 256], strides = [1, 1]} : vector<8x256xf32> to vector<1x256xf32>
    %316 = vector.broadcast %314 : vector<8x1xf32> to vector<8x256xf32>
    %317 = vector.broadcast %315 : vector<1x256xf32> to vector<8x256xf32>
    %318 = arith.mulf %316, %317 : vector<8x256xf32>
    %319 = arith.addf %313, %318 : vector<8x256xf32>
    %320 = vector.extract_strided_slice %1 {offsets = [0, 3], sizes = [8, 1], strides = [1, 1]} : vector<8x8xf32> to vector<8x1xf32>
    %321 = vector.extract_strided_slice %302 {offsets = [3, 0], sizes = [1, 256], strides = [1, 1]} : vector<8x256xf32> to vector<1x256xf32>
    %322 = vector.broadcast %320 : vector<8x1xf32> to vector<8x256xf32>
    %323 = vector.broadcast %321 : vector<1x256xf32> to vector<8x256xf32>
    %324 = arith.mulf %322, %323 : vector<8x256xf32>
    %325 = arith.addf %319, %324 : vector<8x256xf32>
    %326 = vector.extract_strided_slice %1 {offsets = [0, 4], sizes = [8, 1], strides = [1, 1]} : vector<8x8xf32> to vector<8x1xf32>
    %327 = vector.extract_strided_slice %302 {offsets = [4, 0], sizes = [1, 256], strides = [1, 1]} : vector<8x256xf32> to vector<1x256xf32>
    %328 = vector.broadcast %326 : vector<8x1xf32> to vector<8x256xf32>
    %329 = vector.broadcast %327 : vector<1x256xf32> to vector<8x256xf32>
    %330 = arith.mulf %328, %329 : vector<8x256xf32>
    %331 = arith.addf %325, %330 : vector<8x256xf32>
    %332 = vector.extract_strided_slice %1 {offsets = [0, 5], sizes = [8, 1], strides = [1, 1]} : vector<8x8xf32> to vector<8x1xf32>
    %333 = vector.extract_strided_slice %302 {offsets = [5, 0], sizes = [1, 256], strides = [1, 1]} : vector<8x256xf32> to vector<1x256xf32>
    %334 = vector.broadcast %332 : vector<8x1xf32> to vector<8x256xf32>
    %335 = vector.broadcast %333 : vector<1x256xf32> to vector<8x256xf32>
    %336 = arith.mulf %334, %335 : vector<8x256xf32>
    %337 = arith.addf %331, %336 : vector<8x256xf32>
    %338 = vector.extract_strided_slice %1 {offsets = [0, 6], sizes = [8, 1], strides = [1, 1]} : vector<8x8xf32> to vector<8x1xf32>
    %339 = vector.extract_strided_slice %302 {offsets = [6, 0], sizes = [1, 256], strides = [1, 1]} : vector<8x256xf32> to vector<1x256xf32>
    %340 = vector.broadcast %338 : vector<8x1xf32> to vector<8x256xf32>
    %341 = vector.broadcast %339 : vector<1x256xf32> to vector<8x256xf32>
    %342 = arith.mulf %340, %341 : vector<8x256xf32>
    %343 = arith.addf %337, %342 : vector<8x256xf32>
    %344 = vector.extract_strided_slice %1 {offsets = [0, 7], sizes = [8, 1], strides = [1, 1]} : vector<8x8xf32> to vector<8x1xf32>
    %345 = vector.extract_strided_slice %302 {offsets = [7, 0], sizes = [1, 256], strides = [1, 1]} : vector<8x256xf32> to vector<1x256xf32>
    %346 = vector.broadcast %344 : vector<8x1xf32> to vector<8x256xf32>
    %347 = vector.broadcast %345 : vector<1x256xf32> to vector<8x256xf32>
    %348 = arith.mulf %346, %347 : vector<8x256xf32>
    %349 = arith.addf %343, %348 : vector<8x256xf32>
    %350 = vector.broadcast %269 : vector<8x1xf32> to vector<8x256xf32>
    %351 = arith.mulf %349, %350 : vector<8x256xf32>
    %352 = vector.broadcast %271 : vector<8x1xf32> to vector<8x256xf32>
    %353 = arith.addf %351, %352 : vector<8x256xf32>
    %cst_45 = arith.constant 0.000000e+00 : f32
    %354 = vector.broadcast %cst_45 : f32 to vector<8x256xf32>
    %355 = arith.maximumf %353, %354 : vector<8x256xf32>
    %c0_46 = arith.constant 0 : index
    %c0_47 = arith.constant 0 : index
    %c0_48 = arith.constant 0 : index
    %356 = vector.load %arg5[%c0_46, %c0_47, %c0_48] : memref<2x8x256xf32, #tpu.memory_space<vmem>>, vector<1x8x256xf32>
    %357 = vector.shape_cast %356 : vector<1x8x256xf32> to vector<8x256xf32>
    %358 = vector.shape_cast %355 : vector<8x256xf32> to vector<1x8x256xf32>
    tpu.vector_store %arg5[%c0_46, %c0_47, %c0_48], %358 {strides = array<i32>} : memref<2x8x256xf32, #tpu.memory_space<vmem>>, vector<1x8x256xf32>,
    %c1_49 = arith.constant 1 : index
    %c0_50 = arith.constant 0 : index
    %c0_51 = arith.constant 0 : index
    %359 = vector.load %arg1[%c1_49, %c0_50, %c0_51] : memref<2x4x256xf32, #tpu.memory_space<vmem>>, vector<1x4x256xf32>
    %360 = vector.shape_cast %359 : vector<1x4x256xf32> to vector<4x256xf32>
    %361 = vector.extract_strided_slice %0 {offsets = [0, 0], sizes = [8, 1], strides = [1, 1]} : vector<8x4xf32> to vector<8x1xf32>
    %362 = vector.extract_strided_slice %360 {offsets = [0, 0], sizes = [1, 256], strides = [1, 1]} : vector<4x256xf32> to vector<1x256xf32>
    %363 = vector.broadcast %361 : vector<8x1xf32> to vector<8x256xf32>
    %364 = vector.broadcast %362 : vector<1x256xf32> to vector<8x256xf32>
    %365 = arith.mulf %363, %364 : vector<8x256xf32>
    %366 = vector.extract_strided_slice %0 {offsets = [0, 1], sizes = [8, 1], strides = [1, 1]} : vector<8x4xf32> to vector<8x1xf32>
    %367 = vector.extract_strided_slice %360 {offsets = [1, 0], sizes = [1, 256], strides = [1, 1]} : vector<4x256xf32> to vector<1x256xf32>
    %368 = vector.broadcast %366 : vector<8x1xf32> to vector<8x256xf32>
    %369 = vector.broadcast %367 : vector<1x256xf32> to vector<8x256xf32>
    %370 = arith.mulf %368, %369 : vector<8x256xf32>
    %371 = arith.addf %365, %370 : vector<8x256xf32>
    %372 = vector.extract_strided_slice %0 {offsets = [0, 2], sizes = [8, 1], strides = [1, 1]} : vector<8x4xf32> to vector<8x1xf32>
    %373 = vector.extract_strided_slice %360 {offsets = [2, 0], sizes = [1, 256], strides = [1, 1]} : vector<4x256xf32> to vector<1x256xf32>
    %374 = vector.broadcast %372 : vector<8x1xf32> to vector<8x256xf32>
    %375 = vector.broadcast %373 : vector<1x256xf32> to vector<8x256xf32>
    %376 = arith.mulf %374, %375 : vector<8x256xf32>
    %377 = arith.addf %371, %376 : vector<8x256xf32>
    %378 = vector.extract_strided_slice %0 {offsets = [0, 3], sizes = [8, 1], strides = [1, 1]} : vector<8x4xf32> to vector<8x1xf32>
    %379 = vector.extract_strided_slice %360 {offsets = [3, 0], sizes = [1, 256], strides = [1, 1]} : vector<4x256xf32> to vector<1x256xf32>
    %380 = vector.broadcast %378 : vector<8x1xf32> to vector<8x256xf32>
    %381 = vector.broadcast %379 : vector<1x256xf32> to vector<8x256xf32>
    %382 = arith.mulf %380, %381 : vector<8x256xf32>
    %383 = arith.addf %377, %382 : vector<8x256xf32>
    %384 = vector.broadcast %81 : vector<8x1xf32> to vector<8x256xf32>
    %385 = arith.mulf %383, %384 : vector<8x256xf32>
    %386 = vector.broadcast %83 : vector<8x1xf32> to vector<8x256xf32>
    %387 = arith.addf %385, %386 : vector<8x256xf32>
    %cst_52 = arith.constant 0.000000e+00 : f32
    %388 = vector.broadcast %cst_52 : f32 to vector<8x256xf32>
    %389 = arith.maximumf %387, %388 : vector<8x256xf32>
    %390 = vector.extract_strided_slice %1 {offsets = [0, 0], sizes = [8, 1], strides = [1, 1]} : vector<8x8xf32> to vector<8x1xf32>
    %391 = vector.extract_strided_slice %389 {offsets = [0, 0], sizes = [1, 256], strides = [1, 1]} : vector<8x256xf32> to vector<1x256xf32>
    %392 = vector.broadcast %390 : vector<8x1xf32> to vector<8x256xf32>
    %393 = vector.broadcast %391 : vector<1x256xf32> to vector<8x256xf32>
    %394 = arith.mulf %392, %393 : vector<8x256xf32>
    %395 = vector.extract_strided_slice %1 {offsets = [0, 1], sizes = [8, 1], strides = [1, 1]} : vector<8x8xf32> to vector<8x1xf32>
    %396 = vector.extract_strided_slice %389 {offsets = [1, 0], sizes = [1, 256], strides = [1, 1]} : vector<8x256xf32> to vector<1x256xf32>
    %397 = vector.broadcast %395 : vector<8x1xf32> to vector<8x256xf32>
    %398 = vector.broadcast %396 : vector<1x256xf32> to vector<8x256xf32>
    %399 = arith.mulf %397, %398 : vector<8x256xf32>
    %400 = arith.addf %394, %399 : vector<8x256xf32>
    %401 = vector.extract_strided_slice %1 {offsets = [0, 2], sizes = [8, 1], strides = [1, 1]} : vector<8x8xf32> to vector<8x1xf32>
    %402 = vector.extract_strided_slice %389 {offsets = [2, 0], sizes = [1, 256], strides = [1, 1]} : vector<8x256xf32> to vector<1x256xf32>
    %403 = vector.broadcast %401 : vector<8x1xf32> to vector<8x256xf32>
    %404 = vector.broadcast %402 : vector<1x256xf32> to vector<8x256xf32>
    %405 = arith.mulf %403, %404 : vector<8x256xf32>
    %406 = arith.addf %400, %405 : vector<8x256xf32>
    %407 = vector.extract_strided_slice %1 {offsets = [0, 3], sizes = [8, 1], strides = [1, 1]} : vector<8x8xf32> to vector<8x1xf32>
    %408 = vector.extract_strided_slice %389 {offsets = [3, 0], sizes = [1, 256], strides = [1, 1]} : vector<8x256xf32> to vector<1x256xf32>
    %409 = vector.broadcast %407 : vector<8x1xf32> to vector<8x256xf32>
    %410 = vector.broadcast %408 : vector<1x256xf32> to vector<8x256xf32>
    %411 = arith.mulf %409, %410 : vector<8x256xf32>
    %412 = arith.addf %406, %411 : vector<8x256xf32>
    %413 = vector.extract_strided_slice %1 {offsets = [0, 4], sizes = [8, 1], strides = [1, 1]} : vector<8x8xf32> to vector<8x1xf32>
    %414 = vector.extract_strided_slice %389 {offsets = [4, 0], sizes = [1, 256], strides = [1, 1]} : vector<8x256xf32> to vector<1x256xf32>
    %415 = vector.broadcast %413 : vector<8x1xf32> to vector<8x256xf32>
    %416 = vector.broadcast %414 : vector<1x256xf32> to vector<8x256xf32>
    %417 = arith.mulf %415, %416 : vector<8x256xf32>
    %418 = arith.addf %412, %417 : vector<8x256xf32>
    %419 = vector.extract_strided_slice %1 {offsets = [0, 5], sizes = [8, 1], strides = [1, 1]} : vector<8x8xf32> to vector<8x1xf32>
    %420 = vector.extract_strided_slice %389 {offsets = [5, 0], sizes = [1, 256], strides = [1, 1]} : vector<8x256xf32> to vector<1x256xf32>
    %421 = vector.broadcast %419 : vector<8x1xf32> to vector<8x256xf32>
    %422 = vector.broadcast %420 : vector<1x256xf32> to vector<8x256xf32>
    %423 = arith.mulf %421, %422 : vector<8x256xf32>
    %424 = arith.addf %418, %423 : vector<8x256xf32>
    %425 = vector.extract_strided_slice %1 {offsets = [0, 6], sizes = [8, 1], strides = [1, 1]} : vector<8x8xf32> to vector<8x1xf32>
    %426 = vector.extract_strided_slice %389 {offsets = [6, 0], sizes = [1, 256], strides = [1, 1]} : vector<8x256xf32> to vector<1x256xf32>
    %427 = vector.broadcast %425 : vector<8x1xf32> to vector<8x256xf32>
    %428 = vector.broadcast %426 : vector<1x256xf32> to vector<8x256xf32>
    %429 = arith.mulf %427, %428 : vector<8x256xf32>
    %430 = arith.addf %424, %429 : vector<8x256xf32>
    %431 = vector.extract_strided_slice %1 {offsets = [0, 7], sizes = [8, 1], strides = [1, 1]} : vector<8x8xf32> to vector<8x1xf32>
    %432 = vector.extract_strided_slice %389 {offsets = [7, 0], sizes = [1, 256], strides = [1, 1]} : vector<8x256xf32> to vector<1x256xf32>
    %433 = vector.broadcast %431 : vector<8x1xf32> to vector<8x256xf32>
    %434 = vector.broadcast %432 : vector<1x256xf32> to vector<8x256xf32>
    %435 = arith.mulf %433, %434 : vector<8x256xf32>
    %436 = arith.addf %430, %435 : vector<8x256xf32>
    %437 = vector.broadcast %269 : vector<8x1xf32> to vector<8x256xf32>
    %438 = arith.mulf %436, %437 : vector<8x256xf32>
    %439 = vector.broadcast %271 : vector<8x1xf32> to vector<8x256xf32>
    %440 = arith.addf %438, %439 : vector<8x256xf32>
    %cst_53 = arith.constant 0.000000e+00 : f32
    %441 = vector.broadcast %cst_53 : f32 to vector<8x256xf32>
    %442 = arith.maximumf %440, %441 : vector<8x256xf32>
    %c1_54 = arith.constant 1 : index
    %c0_55 = arith.constant 0 : index
    %c0_56 = arith.constant 0 : index
    %443 = vector.load %arg5[%c1_54, %c0_55, %c0_56] : memref<2x8x256xf32, #tpu.memory_space<vmem>>, vector<1x8x256xf32>
    %444 = vector.shape_cast %443 : vector<1x8x256xf32> to vector<8x256xf32>
    %445 = vector.shape_cast %442 : vector<8x256xf32> to vector<1x8x256xf32>
    tpu.vector_store %arg5[%c1_54, %c0_55, %c0_56], %445 {strides = array<i32>} : memref<2x8x256xf32, #tpu.memory_space<vmem>>, vector<1x8x256xf32>,
    return
  }
  func.func @transform_0(%arg0: i32) -> (i32, i32, i32) {
    %c0_i32 = arith.constant 0 : i32
    %c0_i32_0 = arith.constant 0 : i32
    %c0_i32_1 = arith.constant 0 : i32
    %c0_i32_2 = arith.constant 0 : i32
    return %c0_i32, %c0_i32_0, %c0_i32_1 : i32, i32, i32
  }
  func.func @transform_1(%arg0: i32) -> (i32, i32) {
    %c0_i32 = arith.constant 0 : i32
    %c0_i32_0 = arith.constant 0 : i32
    %c0_i32_1 = arith.constant 0 : i32
    return %c0_i32, %c0_i32_0 : i32, i32
  }
  func.func @transform_2(%arg0: i32) -> (i32, i32) {
    %c0_i32 = arith.constant 0 : i32
    %c0_i32_0 = arith.constant 0 : i32
    %c0_i32_1 = arith.constant 0 : i32
    return %c0_i32, %c0_i32_0 : i32, i32
  }
  func.func @transform_3(%arg0: i32) -> (i32, i32) {
    %c0_i32 = arith.constant 0 : i32
    %c0_i32_0 = arith.constant 0 : i32
    %c0_i32_1 = arith.constant 0 : i32
    return %c0_i32, %c0_i32_0 : i32, i32
  }
  func.func @transform_4(%arg0: i32) -> (i32, i32, i32) {
    %c0_i32 = arith.constant 0 : i32
    %c0_i32_0 = arith.constant 0 : i32
    %c0_i32_1 = arith.constant 0 : i32
    %c0_i32_2 = arith.constant 0 : i32
    return %c0_i32, %c0_i32_0, %c0_i32_1 : i32, i32, i32
  }
}

</mosaic_0001>

<bundles_post_ra>
// kernel: feedforward_pallas.1
= control target key start
LH: loop header
LB: loop body
LE: loop exit
PB: predicated region body
PF: predicated region fallthrough
CT: control target
= control target key end

     0   :  { %v507_v0 = vmov 0   ;;  %v508_v2 = vmov 2   ;;  %v509_v3 = vmov 1   ;;  %v510_v4 = vmov 3   ;;  %s511_s21 = smov 1   ;;  %s681_s1 = inlined_call_operand.vmem [shape: f32[8,4], index: 1, kind: input, shape index: {}]   ;;  %s682_s0 = inlined_call_operand.vmem [shape: f32[2,4,256], index: 0, kind: input, shape index: {}]   ;;  %s683_s3 = inlined_call_operand.vmem [shape: f32[8,4], index: 3, kind: input, shape index: {}]   ;;  %s684_s2 = inlined_call_operand.vmem [shape: f32[8,8], index: 2, kind: input, shape index: {}]   ;;  %s685_s4 = inlined_call_operand.vmem [shape: f32[2,8,256], index: 4, kind: output, shape index: {}]  }
   0x1   :  { %487 = vset.pattern.permute.xlu0 %v507_v0  ;;  %v17_v1 = vld [vmem:[%s681_s1] sm:$0xff]  ;;  %489 = vset.pattern.permute.xlu1 %v508_v2  ;;  %v474_v5 = vld [vmem:[%s682_s0 + $0x8] sm:$0xff] }
   0x2   :  { %22 = vperm.xlu0 %487, %v17_v1   ;;  %49 = vperm.xlu1 %489, %v17_v1   ;;  %v19_v6 = vld [vmem:[%s682_s0] sm:$0xff]  ;;  %v89_v9 = vperm.slane %v474_v5, 0  ;;  %v90_v10 = vperm.slane %v474_v5, 4  ;;  %v389_v11 = vperm.slane %v474_v5, 2  ;;  %v390_v12 = vperm.slane %v474_v5, 6 }
   0x3   :  { %491 = vset.pattern.permute.xlu2 %v507_v0  ;;  %v97_v13 = vperm.slane %v474_v5, 1  ;;  %v98_v14 = vperm.slane %v474_v5, 5  ;;  %v26_v15 = vperm.slane %v19_v6, 0  ;;  %v27_v16 = vperm.slane %v19_v6, 4 }
   0x4   :  { %v38_v17 = vperm.slane %v19_v6, 1  ;;  %v39_v18 = vperm.slane %v19_v6, 5  ;;  %v52_v19 = vperm.slane %v19_v6, 2  ;;  %v53_v20 = vperm.slane %v19_v6, 6 }
   0x5   :  { %v399_v21 = vperm.slane %v474_v5, 3  ;;  %v400_v22 = vperm.slane %v474_v5, 7  ;;  %v66_v23 = vperm.slane %v19_v6, 3  ;;  %v67_v24 = vperm.slane %v19_v6, 7 }
   0x6   :  { %v93_v25 = vperm.slane %v89_v9, 0  ;;  %v94_v26 = vperm.slane %v90_v10, 0  ;;  %v393_v27 = vperm.slane %v389_v11, 2  ;;  %v394_v28 = vperm.slane %v390_v12, 2 }
   0x7   :  { %v101_v29 = vperm.slane %v97_v13, 1  ;;  %v102_v30 = vperm.slane %v98_v14, 1  ;;  %v30_v31 = vperm.slane %v26_v15, 0  ;;  %v31_v32 = vperm.slane %v27_v16, 0 }
   0x8   :  { %v42_v33 = vperm.slane %v38_v17, 1  ;;  %v43_v34 = vperm.slane %v39_v18, 1  ;;  %v56_v35 = vperm.slane %v52_v19, 2  ;;  %v57_v36 = vperm.slane %v53_v20, 2 }
   0x9   :  { %v403_v37 = vperm.slane %v399_v21, 3  ;;  %v404_v38 = vperm.slane %v400_v22, 3  ;;  %v70_v39 = vperm.slane %v66_v23, 3  ;;  %v71_v40 = vperm.slane %v67_v24, 3 }
   0xa   :  { %488 = vset.pattern.permute.xlu0 %v509_v3  ;;  %490 = vset.pattern.permute.xlu1 %v510_v4 }
   0xb   :  { %35 = vperm.xlu0 %488, %v17_v1   ;;  %63 = vperm.xlu1 %490, %v17_v1  }
  0x13   :  { %492 = vset.pattern.permute.xlu0 %v507_v0 }
  0x74   :  { %v23_v7 = vpop.permute.xlu0 %22  ;;  %v50_v8 = vpop.permute.xlu1 %49 }
  0x75   :  { %v95_v41 = vmul.f32 %v93_v25, %v23_v7  ;;  %v96_v42 = vmul.f32 %v94_v26, %v23_v7  ;;  %v395_v43 = vmul.f32 %v393_v27, %v50_v8  ;;  %v396_v44 = vmul.f32 %v394_v28, %v50_v8 }
  0x76   :  { %v32_v49 = vmul.f32 %v30_v31, %v23_v7  ;;  %v33_v50 = vmul.f32 %v31_v32, %v23_v7  ;;  %v58_v53 = vmul.f32 %v56_v35, %v50_v8  ;;  %v59_v54 = vmul.f32 %v57_v36, %v50_v8  ;;  %v566_v35 = vld [vmem:[%s683_s3] sm:$0xff] }
  0x7d   :  { %v36_v45 = vpop.permute.xlu0 %35  ;;  %v64_v46 = vpop.permute.xlu1 %63 }
  0x7e   :  { %v103_v47 = vmul.f32 %v101_v29, %v36_v45  ;;  %v104_v48 = vmul.f32 %v102_v30, %v36_v45  ;;  %v44_v51 = vmul.f32 %v42_v33, %v36_v45  ;;  %v45_v52 = vmul.f32 %v43_v34, %v36_v45 }
  0x7f   :  { %v405_v57 = vmul.f32 %v403_v37, %v64_v46  ;;  %v406_v58 = vmul.f32 %v404_v38, %v64_v46  ;;  %v72_v61 = vmul.f32 %v70_v39, %v64_v46  ;;  %v73_v62 = vmul.f32 %v71_v40, %v64_v46  ;;  %v18_v40 = vld [vmem:[%s684_s2] sm:$0xff] }
  0x80   :  { %v387_v55 = vadd.f32 %v103_v47, %v95_v41  ;;  %v388_v56 = vadd.f32 %v104_v48, %v96_v42  ;;  %v46_v59 = vadd.f32 %v44_v51, %v32_v49  ;;  %v47_v60 = vadd.f32 %v45_v52, %v33_v50 }
  0x81   :  { %v512_v41 = vmov 4   ;;  %v513_v45 = vmov 5   ;;  %v514_v46 = vmov 7   ;;  %v515_v49 = vmov 6  }
  0x82   :  { %v397_v63 = vadd.f32 %v395_v43, %v387_v55  ;;  %v398_v0 = vadd.f32 %v396_v44, %v388_v56  ;;  %v60_v1 = vadd.f32 %v58_v53, %v46_v59  ;;  %v61_v5 = vadd.f32 %v59_v54, %v47_v60  ;;  %496 = vset.pattern.permute.xlu1 %v512_v41 }
  0x84   :  { %v407_v6 = vadd.f32 %v405_v57, %v397_v63  ;;  %v408_v9 = vadd.f32 %v406_v58, %v398_v0  ;;  %v553_v10 = vadd.f32 %v72_v61, %v60_v1  ;;  %v555_v7 = vadd.f32 %v73_v62, %v61_v5 }
  0x86   :  { %v76_v8 = vadd.f32 %v555_v7, %v553_v10  ;;  %v80_v11 = vmul.f32 %v553_v10, %v553_v10  ;;  %v81_v12 = vmul.f32 %v555_v7, %v555_v7  ;;  %v127_v14 = vadd.f32 %v408_v9, %v407_v6 }
  0x87   :  { %v131_v15 = vmul.f32 %v407_v6, %v407_v6  ;;  %v132_v16 = vmul.f32 %v408_v9, %v408_v9 }
  0x88   :  { %77 = vadd.xlane.f32.xlu2 %v76_v8  ;;  %v82_v13 = vadd.f32 %v81_v12, %v80_v11 }
  0x89   :  { %v133_v17 = vadd.f32 %v132_v16, %v131_v15 }
  0x8a   :  { %83 = vadd.xlane.f32.xlu1 %v82_v13 }
  0x90   :  { %128 = vadd.xlane.f32.xlu2 %v127_v14 }
  0x98   :  { %134 = vadd.xlane.f32.xlu2 %v133_v17 }
  0xa3   :  { %217 = vperm.xlu1 %496, %v18_v40  }
  0xfb   :  { %v78_v18 = vpop.xlane.xlu2 %77 }
  0xfd   :  { %v84_v22 = vpop.xlane.xlu1 %83 }
 0x103   :  { %v129_v19 = vpop.xlane.xlu2 %128 }
 0x104   :  { %v130_v20 = vadd.f32 %v129_v19, %v78_v18 }
 0x106   :  { %v138_v21 = vmul.f32 0.001953125, %v130_v20 }
 0x108   :  { %v140_v25 = vmul.f32 %v138_v21, %v138_v21 }
 0x10b   :  { %v135_v23 = vpop.xlane.xlu2 %134 }
 0x10c   :  { %v136_v24 = vadd.f32 %v135_v23, %v84_v22 }
 0x10e   :  { %v139_v26 = vmul.f32 0.001953125, %v136_v24 }
 0x110   :  { %v141_v27 = vsub.f32 %v139_v26, %v140_v25 }
 0x112   :  { %v142_v28 = vmax.f32 %v141_v27, 0.0 }
 0x114   :  { %v143_v29 = vadd.f32 1e-05, %v142_v28 }
 0x115   :  { %v602_v13 = vpop.permute.xlu1 %217 }
 0x116   :  { %503 = vrsqrt.f32 %v143_v29  ;;  %vm150_vm1 = vweird.f32 %v143_v29 }
 0x11c   :  { %v504_v30 = vpop.eup %503 }
 0x11d   :  { %v145_v31 = vmul.f32 %v504_v30, %v143_v29  ;;  %vm151_vm0 = vweird.f32 %v504_v30 }
 0x11e   :  { %vm152_vm2 = vmor %vm150_vm1, %vm151_vm0 }
 0x11f   :  { %v146_v32 = vmul.f32 %v504_v30, %v145_v31 }
 0x121   :  { %v147_v33 = vmul.f32 0.5, %v146_v32 }
 0x123   :  { %v148_v34 = vsub.f32 1.5, %v147_v33 }
 0x125   :  { %v149_v36 = vmul.f32 %v504_v30, %v148_v34 }
 0x127   :  { %v153_v37 = vsel %vm152_vm2, %v504_v30, %v149_v36 }
 0x128   :  { %v154_v38 = vmul.f32 %v153_v37, %v566_v35 }
 0x12a   :  { %163 = vperm.xlu2 %491, %v154_v38   ;;  %v155_v39 = vmul.f32 %v154_v38, %v138_v21 }
 0x12c   :  { %157 = vrot.lane.b32.xlu0 %v155_v39, %s511_s21 }
 0x132   :  { %493 = vset.pattern.permute.xlu2 %v509_v3 }
 0x133   :  { %187 = vperm.xlu2 %493, %v18_v40  }
 0x134   :  { %179 = vperm.xlu0 %492, %v18_v40  }
 0x13b   :  { %495 = vset.pattern.permute.xlu2 %v510_v4 }
 0x13c   :  { %494 = vset.pattern.permute.xlu0 %v508_v2  ;;  %207 = vperm.xlu2 %495, %v18_v40  }
 0x13d   :  { %197 = vperm.xlu0 %494, %v18_v40  }
 0x144   :  { %497 = vset.pattern.permute.xlu2 %v513_v45 }
 0x145   :  { %498 = vset.pattern.permute.xlu0 %v509_v3  ;;  %227 = vperm.xlu2 %497, %v18_v40  }
 0x14d   :  { %500 = vset.pattern.permute.xlu2 %v514_v46 }
 0x14e   :  { %247 = vperm.xlu2 %500, %v18_v40  }
 0x156   :  { %501 = vset.pattern.permute.xlu2 %v508_v2 }
 0x184   :  { %v164_v42 = vpop.permute.xlu2 %163 }
 0x185   :  { %v409_v43 = vmul.f32 %v407_v6, %v164_v42  ;;  %v410_v44 = vmul.f32 %v408_v9, %v164_v42  ;;  %v166_v53 = vmul.f32 %v164_v42, %v553_v10  ;;  %v167_v2 = vmul.f32 %v164_v42, %v555_v7 }
 0x18d   :  { %v582_v50 = vpop.permute.xlu2 %187 }
 0x196   :  { %v586_v52 = vpop.permute.xlu2 %207 }
 0x19e   :  { %v158_v47 = vpop.permute.xlu0 %157 }
 0x19f   :  { %v160_v48 = vsub.f32 %v566_v35, %v158_v47  ;;  %v590_v59 = vpop.permute.xlu2 %227 }
 0x1a1   :  { %170 = vperm.xlu0 %498, %v160_v48  }
 0x1a6   :  { %v580_v3 = vpop.permute.xlu0 %179 }
 0x1a8   :  { %v612_v30 = vpop.permute.xlu2 %247 }
 0x1a9   :  { %499 = vset.pattern.permute.xlu0 %v515_v49 }
 0x1aa   :  { %237 = vperm.xlu0 %499, %v18_v40  }
 0x1af   :  { %v584_v51 = vpop.permute.xlu0 %197 }
 0x1b2   :  { %502 = vset.pattern.permute.xlu0 %v510_v4 }
 0x213   :  { %v171_v54 = vpop.permute.xlu0 %170 }
 0x214   :  { %v173_v55 = vadd.f32 %v171_v54, %v166_v53  ;;  %v174_v56 = vadd.f32 %v171_v54, %v167_v2  ;;  %v268_v57 = vadd.f32 %v409_v43, %v171_v54  ;;  %v269_v58 = vadd.f32 %v410_v44, %v171_v54 }
 0x216   :  { %v592_v4 = vmax.f32 %v173_v55, 0.0  ;;  %v270_v60 = vmax.f32 %v268_v57, 0.0  ;;  %v271_v61 = vmax.f32 %v269_v58, 0.0  ;;  %v594_v62 = vmax.f32 %v174_v56, 0.0 }
 0x218   :  { %v272_v63 = vperm.slane %v270_v60, 0  ;;  %v273_v0 = vperm.slane %v271_v61, 0  ;;  %v276_v1 = vperm.slane %v270_v60, 1  ;;  %v277_v5 = vperm.slane %v271_v61, 1 }
 0x219   :  { %v220_v6 = vperm.slane %v592_v4, 4  ;;  %v221_v7 = vperm.slane %v594_v62, 4  ;;  %v437_v8 = vperm.slane %v270_v60, 4  ;;  %v282_v14 = vperm.slane %v270_v60, 2 }
 0x21a   :  { %v274_v9 = vmul.f32 %v272_v63, %v580_v3  ;;  %v275_v10 = vmul.f32 %v273_v0, %v580_v3  ;;  %v278_v11 = vmul.f32 %v276_v1, %v582_v50  ;;  %v279_v12 = vmul.f32 %v277_v5, %v582_v50 }
 0x21b   :  { %v283_v15 = vperm.slane %v271_v61, 2  ;;  %v288_v16 = vperm.slane %v270_v60, 3  ;;  %v289_v17 = vperm.slane %v271_v61, 3  ;;  %v295_v20 = vperm.slane %v271_v61, 4 }
 0x21c   :  { %v280_v18 = vadd.f32 %v278_v11, %v274_v9  ;;  %v281_v19 = vadd.f32 %v279_v12, %v275_v10  ;;  %v284_v21 = vmul.f32 %v282_v14, %v584_v51  ;;  %v608_v25 = vpop.permute.xlu0 %237  ;;  %v296_v26 = vmul.f32 %v437_v8, %v602_v13 }
 0x21d   :  { %v285_v22 = vmul.f32 %v283_v15, %v584_v51  ;;  %v290_v23 = vmul.f32 %v288_v16, %v586_v52  ;;  %v291_v24 = vmul.f32 %v289_v17, %v586_v52  ;;  %v297_v27 = vmul.f32 %v295_v20, %v602_v13 }
 0x21e   :  { %v300_v28 = vperm.slane %v270_v60, 5  ;;  %v301_v29 = vperm.slane %v271_v61, 5  ;;  %v286_v31 = vadd.f32 %v284_v21, %v280_v18  ;;  %v306_v33 = vperm.slane %v270_v60, 6 }
 0x21f   :  { %v287_v32 = vadd.f32 %v285_v22, %v281_v19  ;;  %v307_v34 = vperm.slane %v271_v61, 6  ;;  %v312_v38 = vperm.slane %v270_v60, 7  ;;  %v313_v39 = vperm.slane %v271_v61, 7 }
 0x220   :  { %v302_v36 = vmul.f32 %v300_v28, %v590_v59  ;;  %v303_v37 = vmul.f32 %v301_v29, %v590_v59  ;;  %v292_v40 = vadd.f32 %v290_v23, %v286_v31  ;;  %v308_v42 = vmul.f32 %v306_v33, %v608_v25 }
 0x221   :  { %v293_v41 = vadd.f32 %v291_v24, %v287_v32  ;;  %v309_v43 = vmul.f32 %v307_v34, %v608_v25  ;;  %v314_v44 = vmul.f32 %v312_v38, %v612_v30  ;;  %v315_v45 = vmul.f32 %v313_v39, %v612_v30 }
 0x222   :  { %v182_v46 = vperm.slane %v592_v4, 0  ;;  %v183_v47 = vperm.slane %v594_v62, 0  ;;  %v298_v48 = vadd.f32 %v296_v26, %v292_v40  ;;  %v190_v53 = vperm.slane %v592_v4, 1 }
 0x223   :  { %v299_v49 = vadd.f32 %v297_v27, %v293_v41  ;;  %v191_v2 = vperm.slane %v594_v62, 1  ;;  %v200_v56 = vperm.slane %v592_v4, 2  ;;  %v201_v57 = vperm.slane %v594_v62, 2 }
 0x224   :  { %v184_v54 = vmul.f32 %v182_v46, %v580_v3  ;;  %v185_v55 = vmul.f32 %v183_v47, %v580_v3  ;;  %v304_v58 = vadd.f32 %v302_v36, %v298_v48  ;;  %v192_v61 = vmul.f32 %v190_v53, %v582_v50 }
 0x225   :  { %v305_v60 = vadd.f32 %v303_v37, %v299_v49  ;;  %v193_v63 = vmul.f32 %v191_v2, %v582_v50  ;;  %v202_v0 = vmul.f32 %v200_v56, %v584_v51  ;;  %v203_v1 = vmul.f32 %v201_v57, %v584_v51 }
 0x226   :  { %v210_v5 = vperm.slane %v592_v4, 3  ;;  %v211_v9 = vperm.slane %v594_v62, 3  ;;  %v310_v10 = vadd.f32 %v308_v42, %v304_v58  ;;  %v194_v8 = vadd.f32 %v192_v61, %v184_v54 }
 0x227   :  { %v311_v3 = vadd.f32 %v309_v43, %v305_v60  ;;  %v195_v11 = vadd.f32 %v193_v63, %v185_v55  ;;  %v230_v15 = vperm.slane %v592_v4, 5  ;;  %v231_v50 = vperm.slane %v594_v62, 5 }
 0x228   :  { %v212_v12 = vmul.f32 %v210_v5, %v586_v52  ;;  %v213_v14 = vmul.f32 %v211_v9, %v586_v52  ;;  %v638_v16 = vadd.f32 %v314_v44, %v310_v10  ;;  %v204_v51 = vadd.f32 %v202_v0, %v194_v8 }
 0x229   :  { %v640_v17 = vadd.f32 %v315_v45, %v311_v3  ;;  %v205_v18 = vadd.f32 %v203_v1, %v195_v11  ;;  %v222_v19 = vmul.f32 %v220_v6, %v602_v13  ;;  %v223_v20 = vmul.f32 %v221_v7, %v602_v13 }
 0x22a   :  { %v240_v52 = vperm.slane %v592_v4, 6  ;;  %v241_v21 = vperm.slane %v594_v62, 6  ;;  %v214_v23 = vadd.f32 %v212_v12, %v204_v51  ;;  %v250_v26 = vperm.slane %v592_v4, 7 }
 0x22b   :  { %v318_v22 = vadd.f32 %v640_v17, %v638_v16  ;;  %v215_v24 = vadd.f32 %v213_v14, %v205_v18  ;;  %v232_v27 = vmul.f32 %v230_v15, %v590_v59  ;;  %v233_v28 = vmul.f32 %v231_v50, %v590_v59 }
 0x22c   :  { %v251_v6 = vperm.slane %v594_v62, 7  ;;  %v224_v29 = vadd.f32 %v222_v19, %v214_v23  ;;  %v242_v13 = vmul.f32 %v240_v52, %v608_v25  ;;  %v243_v31 = vmul.f32 %v241_v21, %v608_v25 }
 0x22d   :  { %319 = vadd.xlane.f32.xlu1 %v318_v22  ;;  %v225_v7 = vadd.f32 %v223_v20, %v215_v24  ;;  %v252_v32 = vmul.f32 %v250_v26, %v612_v30  ;;  %v322_v42 = vmul.f32 %v638_v16, %v638_v16  ;;  %v323_v25 = vmul.f32 %v640_v17, %v640_v17 }
 0x22e   :  { %v234_v33 = vadd.f32 %v232_v27, %v224_v29  ;;  %v253_v36 = vmul.f32 %v251_v6, %v612_v30 }
 0x22f   :  { %v235_v34 = vadd.f32 %v233_v28, %v225_v7  ;;  %v324_v43 = vadd.f32 %v323_v25, %v322_v42 }
 0x230   :  { %v244_v4 = vadd.f32 %v242_v13, %v234_v33 }
 0x231   :  { %v245_v37 = vadd.f32 %v243_v31, %v235_v34 }
 0x232   :  { %v254_v38 = vadd.f32 %v252_v32, %v244_v4 }
 0x233   :  { %v255_v39 = vadd.f32 %v253_v36, %v245_v37 }
 0x234   :  { %v260_v40 = vmul.f32 %v254_v38, %v254_v38 }
 0x235   :  { %v256_v59 = vadd.f32 %v255_v39, %v254_v38  ;;  %v261_v62 = vmul.f32 %v255_v39, %v255_v39 }
 0x237   :  { %257 = vadd.xlane.f32.xlu2 %v256_v59  ;;  %v262_v41 = vadd.f32 %v261_v62, %v260_v40 }
 0x239   :  { %263 = vadd.xlane.f32.xlu0 %v262_v41 }
 0x23f   :  { %325 = vadd.xlane.f32.xlu2 %v324_v43 }
 0x2a0   :  { %v320_v44 = vpop.xlane.xlu1 %319 }
 0x2aa   :  { %v258_v30 = vpop.xlane.xlu2 %257 }
 0x2ab   :  { %v321_v45 = vadd.f32 %v320_v44, %v258_v30 }
 0x2ac   :  { %v264_v47 = vpop.xlane.xlu0 %263 }
 0x2ad   :  { %v328_v46 = vmul.f32 0.001953125, %v321_v45 }
 0x2af   :  { %v330_v53 = vmul.f32 %v328_v46, %v328_v46 }
 0x2b2   :  { %v326_v48 = vpop.xlane.xlu2 %325 }
 0x2b3   :  { %v327_v49 = vadd.f32 %v326_v48, %v264_v47 }
 0x2b5   :  { %v329_v2 = vmul.f32 0.001953125, %v327_v49 }
 0x2b7   :  { %v331_v54 = vsub.f32 %v329_v2, %v330_v53 }
 0x2b9   :  { %v332_v55 = vmax.f32 %v331_v54, 0.0 }
 0x2bb   :  { %v333_v56 = vadd.f32 1e-05, %v332_v55 }
 0x2bd   :  { %505 = vrsqrt.f32 %v333_v56  ;;  %vm340_vm4 = vweird.f32 %v333_v56 }
 0x2c3   :  { %v506_v57 = vpop.eup %505 }
 0x2c4   :  { %v335_v58 = vmul.f32 %v506_v57, %v333_v56  ;;  %vm341_vm3 = vweird.f32 %v506_v57 }
 0x2c5   :  { %vm342_vm5 = vmor %vm340_vm4, %vm341_vm3 }
 0x2c6   :  { %v336_v60 = vmul.f32 %v506_v57, %v335_v58 }
 0x2c8   :  { %v337_v61 = vmul.f32 0.5, %v336_v60 }
 0x2ca   :  { %v338_v63 = vsub.f32 1.5, %v337_v61 }
 0x2cc   :  { %v339_v0 = vmul.f32 %v506_v57, %v338_v63 }
 0x2ce   :  { %v343_v1 = vsel %vm342_vm5, %v506_v57, %v339_v0 }
 0x2cf   :  { %v344_v5 = vmul.f32 %v343_v1, %v566_v35 }
 0x2d1   :  { %353 = vperm.xlu2 %501, %v344_v5   ;;  %v345_v9 = vmul.f32 %v344_v5, %v328_v46 }
 0x2d3   :  { %347 = vrot.lane.b32.xlu1 %v345_v9, %s511_s21 }
 0x32b   :  { %v354_v8 = vpop.permute.xlu2 %353 }
 0x32c   :  { %v356_v11 = vmul.f32 %v354_v8, %v254_v38  ;;  %v357_v12 = vmul.f32 %v354_v8, %v255_v39  ;;  %v461_v14 = vmul.f32 %v354_v8, %v638_v16  ;;  %v462_v15 = vmul.f32 %v354_v8, %v640_v17 }
 0x345   :  { %v348_v10 = vpop.permute.xlu1 %347 }
 0x346   :  { %v350_v3 = vsub.f32 %v566_v35, %v348_v10 }
 0x348   :  { %360 = vperm.xlu0 %502, %v350_v3  }
 0x3ba   :  { %v361_v50 = vpop.permute.xlu0 %360 }
 0x3bb   :  { %v363_v51 = vadd.f32 %v361_v50, %v356_v11  ;;  %v364_v18 = vadd.f32 %v361_v50, %v357_v12  ;;  %v463_v19 = vadd.f32 %v461_v14, %v361_v50  ;;  %v464_v20 = vadd.f32 %v462_v15, %v361_v50 }
 0x3bd   :  { %v365_v52 = vmax.f32 %v363_v51, 0.0  ;;  %v366_v21 = vmax.f32 %v364_v18, 0.0  ;;  %v465_v22 = vmax.f32 %v463_v19, 0.0  ;;  %v466_v23 = vmax.f32 %v464_v20, 0.0 }
 0x3bf   :  { %367 = vst [vmem:[%s685_s4] sm:$0xff] %v365_v52 }
 0x3c0   :  { %368 = vst [vmem:[%s685_s4 + $0x8] sm:$0xff] %v366_v21 }
 0x3c1   :  { %476 = vst [vmem:[%s685_s4 + $0x10] sm:$0xff] %v465_v22 }
 0x3c2   :  { %477 = vst [vmem:[%s685_s4 + $0x18] sm:$0xff] %v466_v23 }

</bundles_post_ra>
